<compile_context>
chip_gen: v7x
topology: tpu7x:2x2x1
jax: 0.10.0
libtpu: 0.0.40
codegen_flags: <defaults>
</compile_context>

<pallas_src>
import math
import random

import jax
import jax.numpy as jnp
from jax.experimental import pallas as pl
from jax.experimental.pallas import tpu as pltpu

# ----------------------------- model sizes (small) -----------------------------
SRC_LEN = 8
TRG_LEN = 8
BATCH = 2
SRC_VOCAB = 20
TRG_VOCAB = 16          # decoder.output_dim
D_ENC = 32              # encoder d_model / enc_hid_dim
D_FF = 64
EMB_DIM = 32            # decoder embedding dim
DEC_HID = 32            # decoder.dec_hid_dim
ATTN_DIM = 32
TEACHER_FORCING_RATIO = 0.5

PACK_W = 128            # lane width of the packed-parameter buffers


# ----------------------------- parameter packing -------------------------------
def pack_entries(entries):
    """Pack many small 2-D params into one [rows, 128] f32 buffer (one DMA).

    Each entry starts at a sublane-aligned (multiple-of-8) row offset so that
    in-kernel static slices are aligned loads.
    """
    layout = {}
    off = 0
    for name, a in entries:
        a2 = a if a.ndim == 2 else a.reshape(1, -1)
        assert a2.shape[1] <= PACK_W
        layout[name] = (off, a2.shape[0], a2.shape[1])
        off += ((a2.shape[0] + 7) // 8) * 8
    buf = jnp.zeros((off, PACK_W), jnp.float32)
    for name, a in entries:
        o, r, c = layout[name]
        buf = buf.at[o:o + r, 0:c].set(a.reshape(r, c))
    return buf, layout


def _get(w_ref, layout, name):
    off, r, c = layout[name]
    return w_ref[off:off + r, 0:c]      # static slice of the packed buffer


def _split_gates(w):
    h = w.shape[-1] // 3
    return w[..., 0:h], w[..., h:2 * h], w[..., 2 * h:3 * h]


def build_encoder_pack(p):
    entries = [
        ('wqkv', jnp.concatenate([p['wq'], p['wk'], p['wv']], axis=1)),
        ('bqkv', jnp.concatenate([p['bq'], p['bk'], p['bv']], axis=1)),
        ('wo', p['wo']), ('bo', p['bo_attn']),
        ('w1', p['w1']), ('b1', p['b1']),
        ('w2', p['w2']), ('b2', p['b2']),
        ('g1', p['g1']), ('be1', p['be1']),
        ('g2', p['g2']), ('be2', p['be2']),
    ]
    return pack_entries(entries)


def build_decoder_pack(p):
    entries = [('emb', p['dec_emb']),
               ('wa_h', p['wa_h']), ('wa_e', p['wa_e']),
               ('ba', p['ba']), ('va', p['va'])]
    for base in ('w1ih_e', 'w1ih_w', 'w1hh', 'b1ih', 'b1hh',
                 'w2ih', 'w2hh', 'b2ih', 'b2hh'):
        r, z, n = _split_gates(p[base])
        entries += [(base + '_r', r), (base + '_z', z), (base + '_n', n)]
    entries += [('wo_h', p['wo_h']), ('wo_w', p['wo_w']),
                ('wo_e', p['wo_e']), ('bo', p['bo'])]
    return pack_entries(entries)


# ----------------------------- encoder kernel ---------------------------------
def _layer_norm(x, gamma, beta, eps=1e-5):
    mu = jnp.mean(x, axis=-1, keepdims=True)
    var = jnp.mean((x - mu) ** 2, axis=-1, keepdims=True)
    return (x - mu) * jax.lax.rsqrt(var + eps) * gamma + beta


def make_encoder_kernel(layout, B, S):
    D = D_ENC

    def encoder_kernel(x_ref, mask_ref, w_ref, out_ref):
        g = lambda name: _get(w_ref, layout, name)
        x = x_ref[...]                                   # [B*S, D] (flat)
        mask = mask_ref[...]                             # [B, S] (1=valid, 0=pad)
        scale = 1.0 / math.sqrt(D)

        # fused Q/K/V projection: one [B*S, D] x [D, 3D] MXU matmul
        qkv = jnp.dot(x, g('wqkv'), preferred_element_type=jnp.float32) + g('bqkv')
        q = qkv[:, 0:D].reshape(B, S, D)
        k = qkv[:, D:2 * D].reshape(B, S, D)
        v = qkv[:, 2 * D:3 * D].reshape(B, S, D)

        scores = jnp.einsum('bsd,btd->bst', q, k,
                            preferred_element_type=jnp.float32) * scale
        scores = scores + (mask[:, None, :] - 1.0) * 1e9          # key-padding mask
        scores = scores - jnp.max(scores, axis=-1, keepdims=True)
        p = jnp.exp(scores)
        p = p * pl.reciprocal(jnp.sum(p, axis=-1, keepdims=True), approx=True)

        attn = jnp.einsum('bst,btd->bsd', p, v,
                          preferred_element_type=jnp.float32).reshape(B * S, D)
        attn = jnp.dot(attn, g('wo'), preferred_element_type=jnp.float32) + g('bo')
        x1 = _layer_norm(x + attn, g('g1'), g('be1'))

        h = jnp.maximum(
            jnp.dot(x1, g('w1'), preferred_element_type=jnp.float32) + g('b1'), 0.0)
        ffn = jnp.dot(h, g('w2'), preferred_element_type=jnp.float32) + g('b2')
        out_ref[...] = _layer_norm(x1 + ffn, g('g2'), g('be2'))

    return encoder_kernel


# ----------------------------- decoder kernel ---------------------------------
def _gru_cell(x_r, x_z, x_n, h, whh_r, whh_z, whh_n,
              bih_r, bih_z, bih_n, bhh_r, bhh_z, bhh_n):
    """PyTorch GRUCell semantics, gate order (r, z, n); per-gate weights pre-split."""
    r = jax.nn.sigmoid(x_r + bih_r
                       + jnp.dot(h, whh_r, preferred_element_type=jnp.float32) + bhh_r)
    z = jax.nn.sigmoid(x_z + bih_z
                       + jnp.dot(h, whh_z, preferred_element_type=jnp.float32) + bhh_z)
    n = jnp.tanh(x_n + bih_n
                 + r * (jnp.dot(h, whh_n, preferred_element_type=jnp.float32) + bhh_n))
    return (1.0 - z) * n + z * h


def make_decoder_kernel(layout, B, S, trg_len):
    D, V, E, H, A = D_ENC, TRG_VOCAB, EMB_DIM, DEC_HID, ATTN_DIM

    def decoder_kernel(tf_ref, trg_oh_ref, enc_ref, mask_ref, w_ref, out_ref):
        g = lambda name: _get(w_ref, layout, name)

        # ---- timestep-invariant precompute (hoisted out of the decode loop) ----
        enc_flat = enc_ref[...]                                   # [B*S, D]
        enc = enc_flat.reshape(B, S, D)                           # [B, S, D]
        mask_bias = (mask_ref[...] - 1.0) * 1e9                   # [B, S]
        part_e = (jnp.dot(enc_flat, g('wa_e'),
                          preferred_element_type=jnp.float32)
                  + g('ba')).reshape(B, S, A)                     # Bahdanau keys
        va_b = jnp.broadcast_to(g('va').reshape(1, 1, A), (B, S, A))
        col = jax.lax.broadcasted_iota(jnp.int32, (B, V), 1)

        emb_w = g('emb')
        wa_h = g('wa_h')
        w1ih_e = (g('w1ih_e_r'), g('w1ih_e_z'), g('w1ih_e_n'))
        w1ih_w = (g('w1ih_w_r'), g('w1ih_w_z'), g('w1ih_w_n'))
        w1hh = (g('w1hh_r'), g('w1hh_z'), g('w1hh_n'))
        b1ih = (g('b1ih_r'), g('b1ih_z'), g('b1ih_n'))
        b1hh = (g('b1hh_r'), g('b1hh_z'), g('b1hh_n'))
        w2ih = (g('w2ih_r'), g('w2ih_z'), g('w2ih_n'))
        w2hh = (g('w2hh_r'), g('w2hh_z'), g('w2hh_n'))
        b2ih = (g('b2ih_r'), g('b2ih_z'), g('b2ih_n'))
        b2hh = (g('b2hh_r'), g('b2hh_z'), g('b2hh_n'))
        wo_h, wo_w, wo_e, bo = g('wo_h'), g('wo_w'), g('wo_e'), g('bo')

        h1 = jnp.zeros((B, H), jnp.float32)
        h2 = jnp.zeros((B, H), jnp.float32)
        inp_oh = trg_oh_ref[0]                                    # input = trg[0, :]

        # Single invocation: T-1 decode steps statically unrolled (T is a small,
        # compile-time constant) -> no per-grid-step pipeline overhead.
        for t in range(1, trg_len):
            embedded = jnp.dot(inp_oh, emb_w,
                               preferred_element_type=jnp.float32)            # [B, E]

            # --- Bahdanau attention over encoder outputs (keys precomputed) ---
            part_h = jnp.dot(h1, wa_h, preferred_element_type=jnp.float32)    # [B, A]
            energy = jnp.tanh(part_h[:, None, :] + part_e)                    # [B, S, A]
            scores = jnp.sum(energy * va_b, axis=-1) + mask_bias              # [B, S]
            scores = scores - jnp.max(scores, axis=-1, keepdims=True)
            e = jnp.exp(scores)
            a = e * pl.reciprocal(jnp.sum(e, axis=-1, keepdims=True), approx=True)
            weighted = jnp.sum(a[:, :, None] * enc, axis=1)                   # [B, D]

            # --- two stacked GRU cells (hidden1, hidden2) ---
            x_r = (jnp.dot(embedded, w1ih_e[0], preferred_element_type=jnp.float32)
                   + jnp.dot(weighted, w1ih_w[0], preferred_element_type=jnp.float32))
            x_z = (jnp.dot(embedded, w1ih_e[1], preferred_element_type=jnp.float32)
                   + jnp.dot(weighted, w1ih_w[1], preferred_element_type=jnp.float32))
            x_n = (jnp.dot(embedded, w1ih_e[2], preferred_element_type=jnp.float32)
                   + jnp.dot(weighted, w1ih_w[2], preferred_element_type=jnp.float32))
            h1 = _gru_cell(x_r, x_z, x_n, h1, *w1hh, *b1ih, *b1hh)

            y_r = jnp.dot(h1, w2ih[0], preferred_element_type=jnp.float32)
            y_z = jnp.dot(h1, w2ih[1], preferred_element_type=jnp.float32)
            y_n = jnp.dot(h1, w2ih[2], preferred_element_type=jnp.float32)
            h2 = _gru_cell(y_r, y_z, y_n, h2, *w2hh, *b2ih, *b2hh)

            # --- output projection over [h2 ; context ; embedded] ---
            logits = (jnp.dot(h2, wo_h, preferred_element_type=jnp.float32)
                      + jnp.dot(weighted, wo_w, preferred_element_type=jnp.float32)
                      + jnp.dot(embedded, wo_e, preferred_element_type=jnp.float32)
                      + bo)                                                    # [B, V]
            out_ref[t - 1] = logits

            # --- next input: teacher forcing (host coin) vs greedy argmax ---
            # (skipped on the final step: that input is never used, matching PyTorch)
            if t < trg_len - 1:
                tf = (tf_ref[t] > 0).astype(jnp.float32)
                mx = jnp.max(logits, axis=-1, keepdims=True)
                first_max = jnp.min(jnp.where(logits >= mx, col, V),
                                    axis=-1, keepdims=True)      # first-max tie rule
                pred_oh = (col == first_max).astype(jnp.float32)
                inp_oh = tf * trg_oh_ref[t] + (1.0 - tf) * pred_oh

    return decoder_kernel


# ----------------------------- parameters & glue -------------------------------
def sinusoidal_pe(length, d):
    pos = jnp.arange(length, dtype=jnp.float32)[:, None]
    idx = jnp.arange(0, d, 2, dtype=jnp.float32)
    div = jnp.exp(-math.log(10000.0) * idx / d)
    pe = jnp.zeros((length, d), jnp.float32)
    pe = pe.at[:, 0::2].set(jnp.sin(pos * div))
    pe = pe.at[:, 1::2].set(jnp.cos(pos * div))
    return pe


def init_params(key):
    names_shapes = [
        ('src_emb', (SRC_VOCAB, D_ENC)),
        ('wq', (D_ENC, D_ENC)), ('wk', (D_ENC, D_ENC)),
        ('wv', (D_ENC, D_ENC)), ('wo', (D_ENC, D_ENC)),
        ('w1', (D_ENC, D_FF)), ('w2', (D_FF, D_ENC)),
        ('dec_emb', (TRG_VOCAB, EMB_DIM)),
        ('wa_h', (DEC_HID, ATTN_DIM)), ('wa_e', (D_ENC, ATTN_DIM)),
        ('va', (1, ATTN_DIM)),
        ('w1ih_e', (EMB_DIM, 3 * DEC_HID)), ('w1ih_w', (D_ENC, 3 * DEC_HID)),
        ('w1hh', (DEC_HID, 3 * DEC_HID)),
        ('w2ih', (DEC_HID, 3 * DEC_HID)), ('w2hh', (DEC_HID, 3 * DEC_HID)),
        ('wo_h', (DEC_HID, TRG_VOCAB)), ('wo_w', (D_ENC, TRG_VOCAB)),
        ('wo_e', (EMB_DIM, TRG_VOCAB)),
    ]
    keys = jax.random.split(key, len(names_shapes))
    params = {n: 0.1 * jax.random.normal(k, s, jnp.float32)
              for (n, s), k in zip(names_shapes, keys)}
    for n, d in [('bq', D_ENC), ('bk', D_ENC), ('bv', D_ENC), ('bo_attn', D_ENC),
                 ('b1', D_FF), ('b2', D_ENC), ('be1', D_ENC), ('be2', D_ENC),
                 ('ba', ATTN_DIM), ('b1ih', 3 * DEC_HID), ('b1hh', 3 * DEC_HID),
                 ('b2ih', 3 * DEC_HID), ('b2hh', 3 * DEC_HID), ('bo', TRG_VOCAB)]:
        params[n] = jnp.zeros((1, d), jnp.float32)
    params['g1'] = jnp.ones((1, D_ENC), jnp.float32)
    params['g2'] = jnp.ones((1, D_ENC), jnp.float32)
    return params


def hybrid_nmt_forward(params, enc_buf, enc_layout, dec_buf, dec_layout,
                       src, src_mask, trg, tf_flags):
    """src: [S, B] int32; src_mask: [B, S] float (1=valid); trg: [T, B] int32;
    tf_flags: [T] int32 host-drawn teacher-forcing coins.
    Returns outputs: [T, B, TRG_VOCAB] (row 0 is ones, as in the PyTorch module)."""
    S, B = src.shape
    T = trg.shape[0]

    # ---- encoder embedding + positional encoding (host glue) ----
    x = params['src_emb'][src] * math.sqrt(D_ENC) + sinusoidal_pe(S, D_ENC)[:, None, :]
    x = jnp.transpose(x, (1, 0, 2)).reshape(B * S, D_ENC).astype(jnp.float32)

    vmem = lambda: pl.BlockSpec(memory_space=pltpu.MemorySpace.VMEM)
    smem = lambda: pl.BlockSpec(memory_space=pltpu.MemorySpace.SMEM)

    enc_out = pl.pallas_call(
        make_encoder_kernel(enc_layout, B, S),
        out_shape=jax.ShapeDtypeStruct((B * S, D_ENC), jnp.float32),
        in_specs=[vmem(), vmem(), vmem()],
        out_specs=vmem(),
        compiler_params=pltpu.CompilerParams(vmem_limit_bytes=32 * 1024 * 1024),
    )(x, src_mask, enc_buf)

    # ---- decoder: single kernel invocation, decode loop unrolled inside ----
    trg_oh = jax.nn.one_hot(trg, TRG_VOCAB, dtype=jnp.float32)       # [T, B, V]
    dec_out = pl.pallas_call(
        make_decoder_kernel(dec_layout, B, S, T),
        out_shape=jax.ShapeDtypeStruct((T - 1, B, TRG_VOCAB), jnp.float32),
        in_specs=[smem(), vmem(), vmem(), vmem(), vmem()],
        out_specs=vmem(),
        compiler_params=pltpu.CompilerParams(vmem_limit_bytes=32 * 1024 * 1024),
    )(tf_flags, trg_oh, enc_out, src_mask, dec_buf)

    # outputs = torch.ones(...) and the loop fills rows 1..T-1
    outputs = jnp.concatenate(
        [jnp.ones((1, B, TRG_VOCAB), jnp.float32), dec_out], axis=0)
    return outputs


# ----------------------------------- main --------------------------------------
if __name__ == "__main__":
    key = jax.random.PRNGKey(0)
    kp, ks, kt = jax.random.split(key, 3)
    params = init_params(kp)
    enc_buf, enc_layout = build_encoder_pack(params)
    dec_buf, dec_layout = build_decoder_pack(params)

    src = jax.random.randint(ks, (SRC_LEN, BATCH), 0, SRC_VOCAB, dtype=jnp.int32)
    trg = jax.random.randint(kt, (TRG_LEN, BATCH), 0, TRG_VOCAB, dtype=jnp.int32)
    src_mask = jnp.ones((BATCH, SRC_LEN), jnp.float32)
    src_mask = src_mask.at[1, SRC_LEN - 2:].set(0.0)     # some padding in batch item 1

    # host-side teacher-forcing coin flips (matches random.random() < ratio per step)
    random.seed(0)
    tf_flags = jnp.array(
        [0] + [1 if random.random() < TEACHER_FORCING_RATIO else 0
               for _ in range(1, TRG_LEN)], dtype=jnp.int32)

    out = hybrid_nmt_forward(params, enc_buf, enc_layout, dec_buf, dec_layout,
                             src, src_mask, trg, tf_flags)
    out = jax.block_until_ready(out)
    assert out.shape == (TRG_LEN, BATCH, TRG_VOCAB)
    assert bool(jnp.all(out[0] == 1.0))
    print("KERNEL_OK")
</pallas_src>

<mosaic_0001>
module attributes {stable_mosaic.version = 11 : i64} {
  func.func @encoder_kernel(%arg0: memref<16x32xf32, #tpu.memory_space<vmem>>, %arg1: memref<2x8xf32, #tpu.memory_space<vmem>>, %arg2: memref<224x128xf32, #tpu.memory_space<vmem>>, %arg3: memref<16x32xf32, #tpu.memory_space<vmem>>) attributes {dimension_semantics = [], scalar_prefetch = 0 : i64, scratch_operands = 0 : i64, tpu.core_type = #tpu.core_type<tc>} {
    %c0 = arith.constant 0 : index
    %c0_0 = arith.constant 0 : index
    %0 = vector.load %arg0[%c0, %c0_0] : memref<16x32xf32, #tpu.memory_space<vmem>>, vector<16x32xf32>
    %c0_1 = arith.constant 0 : index
    %c0_2 = arith.constant 0 : index
    %1 = vector.load %arg1[%c0_1, %c0_2] : memref<2x8xf32, #tpu.memory_space<vmem>>, vector<2x8xf32>
    %c0_3 = arith.constant 0 : index
    %c0_4 = arith.constant 0 : index
    %2 = vector.load %arg2[%c0_3, %c0_4] : memref<224x128xf32, #tpu.memory_space<vmem>>, vector<32x96xf32>
    %cst = arith.constant dense<0.000000e+00> : vector<16x96xf32>
    %3 = tpu.matmul %0, %2, %cst {dimension_numbers = #tpu.dot_dimension_numbers<[1], [0], [0], [1], [0, 0, 1, 1], [], []>} : vector<16x32xf32>, vector<32x96xf32>, vector<16x96xf32> -> vector<16x96xf32>
    %c32 = arith.constant 32 : index
    %c0_5 = arith.constant 0 : index
    %4 = vector.load %arg2[%c32, %c0_5] : memref<224x128xf32, #tpu.memory_space<vmem>>, vector<1x96xf32>
    %5 = vector.broadcast %4 : vector<1x96xf32> to vector<16x96xf32>
    %6 = arith.addf %3, %5 : vector<16x96xf32>
    %7 = vector.extract_strided_slice %6 {offsets = [0, 0], sizes = [16, 32], strides = [1, 1]} : vector<16x96xf32> to vector<16x32xf32>
    %8 = vector.shape_cast %7 : vector<16x32xf32> to vector<2x8x32xf32>
    %9 = vector.extract_strided_slice %6 {offsets = [0, 32], sizes = [16, 32], strides = [1, 1]} : vector<16x96xf32> to vector<16x32xf32>
    %10 = vector.shape_cast %9 : vector<16x32xf32> to vector<2x8x32xf32>
    %11 = vector.extract_strided_slice %6 {offsets = [0, 64], sizes = [16, 32], strides = [1, 1]} : vector<16x96xf32> to vector<16x32xf32>
    %12 = vector.shape_cast %11 : vector<16x32xf32> to vector<2x8x32xf32>
    "tpu.trace_start"() <{level = 10 : i32, message = "bsd,btd->bst"}> : () -> ()
    %cst_6 = arith.constant dense<0.000000e+00> : vector<2x8x8xf32>
    %13 = tpu.matmul %8, %10, %cst_6 {dimension_numbers = #tpu.dot_dimension_numbers<[2], [2], [1], [1], [0, 0, 0, 1, 1, 1], [0], [0]>} : vector<2x8x32xf32>, vector<2x8x32xf32>, vector<2x8x8xf32> -> vector<2x8x8xf32>
    "tpu.trace_stop"() : () -> ()
    %cst_7 = arith.constant 0.176776692 : f32
    %14 = vector.broadcast %cst_7 : f32 to vector<2x8x8xf32>
    %15 = arith.mulf %13, %14 : vector<2x8x8xf32>
    %16 = vector.shape_cast %1 : vector<2x8xf32> to vector<2x1x8xf32>
    %cst_8 = arith.constant 1.000000e+00 : f32
    %17 = vector.broadcast %cst_8 : f32 to vector<2x1x8xf32>
    %18 = arith.subf %16, %17 : vector<2x1x8xf32>
    %cst_9 = arith.constant 1.000000e+09 : f32
    %19 = vector.broadcast %cst_9 : f32 to vector<2x1x8xf32>
    %20 = arith.mulf %18, %19 : vector<2x1x8xf32>
    %21 = vector.broadcast %20 : vector<2x1x8xf32> to vector<2x8x8xf32>
    %22 = arith.addf %15, %21 : vector<2x8x8xf32>
    %cst_10 = arith.constant dense<0xFF800000> : vector<2x8xf32>
    %23 = vector.multi_reduction <maximumf>, %22, %cst_10 [2] : vector<2x8x8xf32> to vector<2x8xf32>
    %24 = vector.shape_cast %23 : vector<2x8xf32> to vector<2x8x1xf32>
    %25 = vector.broadcast %24 : vector<2x8x1xf32> to vector<2x8x8xf32>
    %26 = arith.subf %22, %25 : vector<2x8x8xf32>
    %27 = math.exp %26 : vector<2x8x8xf32>
    %cst_11 = arith.constant dense<0.000000e+00> : vector<2x8xf32>
    %28 = vector.multi_reduction <add>, %27, %cst_11 [2] : vector<2x8x8xf32> to vector<2x8xf32>
    %29 = vector.shape_cast %28 : vector<2x8xf32> to vector<2x8x1xf32>
    %30 = tpu.reciprocal %29 {approx = true} : vector<2x8x1xf32> -> vector<2x8x1xf32>
    %31 = vector.broadcast %30 : vector<2x8x1xf32> to vector<2x8x8xf32>
    %32 = arith.mulf %27, %31 : vector<2x8x8xf32>
    "tpu.trace_start"() <{level = 10 : i32, message = "bst,btd->bsd"}> : () -> ()
    %cst_12 = arith.constant dense<0.000000e+00> : vector<2x8x32xf32>
    %33 = tpu.matmul %32, %12, %cst_12 {dimension_numbers = #tpu.dot_dimension_numbers<[2], [1], [1], [2], [0, 0, 0, 1, 1, 2], [0], [0]>} : vector<2x8x8xf32>, vector<2x8x32xf32>, vector<2x8x32xf32> -> vector<2x8x32xf32>
    "tpu.trace_stop"() : () -> ()
    %34 = vector.shape_cast %33 : vector<2x8x32xf32> to vector<16x32xf32>
    %c40 = arith.constant 40 : index
    %c0_13 = arith.constant 0 : index
    %35 = vector.load %arg2[%c40, %c0_13] : memref<224x128xf32, #tpu.memory_space<vmem>>, vector<32x32xf32>
    %cst_14 = arith.constant dense<0.000000e+00> : vector<16x32xf32>
    %36 = tpu.matmul %34, %35, %cst_14 {dimension_numbers = #tpu.dot_dimension_numbers<[1], [0], [0], [1], [0, 0, 1, 1], [], []>} : vector<16x32xf32>, vector<32x32xf32>, vector<16x32xf32> -> vector<16x32xf32>
    %c72 = arith.constant 72 : index
    %c0_15 = arith.constant 0 : index
    %37 = vector.load %arg2[%c72, %c0_15] : memref<224x128xf32, #tpu.memory_space<vmem>>, vector<1x32xf32>
    %38 = vector.broadcast %37 : vector<1x32xf32> to vector<16x32xf32>
    %39 = arith.addf %36, %38 : vector<16x32xf32>
    %40 = arith.addf %0, %39 : vector<16x32xf32>
    %c192 = arith.constant 192 : index
    %c0_16 = arith.constant 0 : index
    %41 = vector.load %arg2[%c192, %c0_16] : memref<224x128xf32, #tpu.memory_space<vmem>>, vector<1x32xf32>
    %c200 = arith.constant 200 : index
    %c0_17 = arith.constant 0 : index
    %42 = vector.load %arg2[%c200, %c0_17] : memref<224x128xf32, #tpu.memory_space<vmem>>, vector<1x32xf32>
    %cst_18 = arith.constant dense<0.000000e+00> : vector<16xf32>
    %43 = vector.multi_reduction <add>, %40, %cst_18 [1] : vector<16x32xf32> to vector<16xf32>
    %44 = vector.shape_cast %43 : vector<16xf32> to vector<16x1xf32>
    %cst_19 = arith.constant 3.200000e+01 : f32
    %45 = vector.broadcast %cst_19 : f32 to vector<16x1xf32>
    %46 = arith.divf %44, %45 : vector<16x1xf32>
    %47 = vector.broadcast %46 : vector<16x1xf32> to vector<16x32xf32>
    %48 = arith.subf %40, %47 : vector<16x32xf32>
    %49 = arith.mulf %48, %48 : vector<16x32xf32>
    %cst_20 = arith.constant dense<0.000000e+00> : vector<16xf32>
    %50 = vector.multi_reduction <add>, %49, %cst_20 [1] : vector<16x32xf32> to vector<16xf32>
    %51 = vector.shape_cast %50 : vector<16xf32> to vector<16x1xf32>
    %cst_21 = arith.constant 3.200000e+01 : f32
    %52 = vector.broadcast %cst_21 : f32 to vector<16x1xf32>
    %53 = arith.divf %51, %52 : vector<16x1xf32>
    %54 = vector.broadcast %46 : vector<16x1xf32> to vector<16x32xf32>
    %55 = arith.subf %40, %54 : vector<16x32xf32>
    %cst_22 = arith.constant 9.99999974E-6 : f32
    %56 = vector.broadcast %cst_22 : f32 to vector<16x1xf32>
    %57 = arith.addf %53, %56 : vector<16x1xf32>
    %58 = math.rsqrt %57 : vector<16x1xf32>
    %59 = vector.broadcast %58 : vector<16x1xf32> to vector<16x32xf32>
    %60 = arith.mulf %55, %59 : vector<16x32xf32>
    %61 = vector.broadcast %41 : vector<1x32xf32> to vector<16x32xf32>
    %62 = arith.mulf %60, %61 : vector<16x32xf32>
    %63 = vector.broadcast %42 : vector<1x32xf32> to vector<16x32xf32>
    %64 = arith.addf %62, %63 : vector<16x32xf32>
    %c80 = arith.constant 80 : index
    %c0_23 = arith.constant 0 : index
    %65 = vector.load %arg2[%c80, %c0_23] : memref<224x128xf32, #tpu.memory_space<vmem>>, vector<32x64xf32>
    %cst_24 = arith.constant dense<0.000000e+00> : vector<16x64xf32>
    %66 = tpu.matmul %64, %65, %cst_24 {dimension_numbers = #tpu.dot_dimension_numbers<[1], [0], [0], [1], [0, 0, 1, 1], [], []>} : vector<16x32xf32>, vector<32x64xf32>, vector<16x64xf32> -> vector<16x64xf32>
    %c112 = arith.constant 112 : index
    %c0_25 = arith.constant 0 : index
    %67 = vector.load %arg2[%c112, %c0_25] : memref<224x128xf32, #tpu.memory_space<vmem>>, vector<1x64xf32>
    %68 = vector.broadcast %67 : vector<1x64xf32> to vector<16x64xf32>
    %69 = arith.addf %66, %68 : vector<16x64xf32>
    %cst_26 = arith.constant 0.000000e+00 : f32
    %70 = vector.broadcast %cst_26 : f32 to vector<16x64xf32>
    %71 = arith.maximumf %69, %70 : vector<16x64xf32>
    %c120 = arith.constant 120 : index
    %c0_27 = arith.constant 0 : index
    %72 = vector.load %arg2[%c120, %c0_27] : memref<224x128xf32, #tpu.memory_space<vmem>>, vector<64x32xf32>
    %cst_28 = arith.constant dense<0.000000e+00> : vector<16x32xf32>
    %73 = tpu.matmul %71, %72, %cst_28 {dimension_numbers = #tpu.dot_dimension_numbers<[1], [0], [0], [1], [0, 0, 1, 1], [], []>} : vector<16x64xf32>, vector<64x32xf32>, vector<16x32xf32> -> vector<16x32xf32>
    %c184 = arith.constant 184 : index
    %c0_29 = arith.constant 0 : index
    %74 = vector.load %arg2[%c184, %c0_29] : memref<224x128xf32, #tpu.memory_space<vmem>>, vector<1x32xf32>
    %75 = vector.broadcast %74 : vector<1x32xf32> to vector<16x32xf32>
    %76 = arith.addf %73, %75 : vector<16x32xf32>
    %77 = arith.addf %64, %76 : vector<16x32xf32>
    %c208 = arith.constant 208 : index
    %c0_30 = arith.constant 0 : index
    %78 = vector.load %arg2[%c208, %c0_30] : memref<224x128xf32, #tpu.memory_space<vmem>>, vector<1x32xf32>
    %c216 = arith.constant 216 : index
    %c0_31 = arith.constant 0 : index
    %79 = vector.load %arg2[%c216, %c0_31] : memref<224x128xf32, #tpu.memory_space<vmem>>, vector<1x32xf32>
    %cst_32 = arith.constant dense<0.000000e+00> : vector<16xf32>
    %80 = vector.multi_reduction <add>, %77, %cst_32 [1] : vector<16x32xf32> to vector<16xf32>
    %81 = vector.shape_cast %80 : vector<16xf32> to vector<16x1xf32>
    %cst_33 = arith.constant 3.200000e+01 : f32
    %82 = vector.broadcast %cst_33 : f32 to vector<16x1xf32>
    %83 = arith.divf %81, %82 : vector<16x1xf32>
    %84 = vector.broadcast %83 : vector<16x1xf32> to vector<16x32xf32>
    %85 = arith.subf %77, %84 : vector<16x32xf32>
    %86 = arith.mulf %85, %85 : vector<16x32xf32>
    %cst_34 = arith.constant dense<0.000000e+00> : vector<16xf32>
    %87 = vector.multi_reduction <add>, %86, %cst_34 [1] : vector<16x32xf32> to vector<16xf32>
    %88 = vector.shape_cast %87 : vector<16xf32> to vector<16x1xf32>
    %cst_35 = arith.constant 3.200000e+01 : f32
    %89 = vector.broadcast %cst_35 : f32 to vector<16x1xf32>
    %90 = arith.divf %88, %89 : vector<16x1xf32>
    %91 = vector.broadcast %83 : vector<16x1xf32> to vector<16x32xf32>
    %92 = arith.subf %77, %91 : vector<16x32xf32>
    %cst_36 = arith.constant 9.99999974E-6 : f32
    %93 = vector.broadcast %cst_36 : f32 to vector<16x1xf32>
    %94 = arith.addf %90, %93 : vector<16x1xf32>
    %95 = math.rsqrt %94 : vector<16x1xf32>
    %96 = vector.broadcast %95 : vector<16x1xf32> to vector<16x32xf32>
    %97 = arith.mulf %92, %96 : vector<16x32xf32>
    %98 = vector.broadcast %78 : vector<1x32xf32> to vector<16x32xf32>
    %99 = arith.mulf %97, %98 : vector<16x32xf32>
    %100 = vector.broadcast %79 : vector<1x32xf32> to vector<16x32xf32>
    %101 = arith.addf %99, %100 : vector<16x32xf32>
    %c0_37 = arith.constant 0 : index
    %c0_38 = arith.constant 0 : index
    %102 = vector.load %arg3[%c0_37, %c0_38] : memref<16x32xf32, #tpu.memory_space<vmem>>, vector<16x32xf32>
    tpu.vector_store %arg3[%c0_37, %c0_38], %101 {strides = array<i32>} : memref<16x32xf32, #tpu.memory_space<vmem>>, vector<16x32xf32>,
    return
  }
}

</mosaic_0001>

<bundles_post_ra>
// kernel: tpu_custom_call.1
= control target key start
LH: loop header
LB: loop body
LE: loop exit
PB: predicated region body
PF: predicated region fallthrough
CT: control target
= control target key end

     0   :  { %8 = vsyncpa [#allocation3], 0  ;;  %s1280_s0 = inlined_call_operand.hbm [shape: f32[16,32], index: 0, kind: input, shape index: {}]   ;;  %s1281_s1 = inlined_call_operand.vmem [shape: f32[2,8], index: 1, kind: input, shape index: {}]   ;;  %s1282_s2 = inlined_call_operand.hbm [shape: f32[224,128], index: 2, kind: input, shape index: {}]   ;;  %s1283_s3 = inlined_call_operand.hbm [shape: f32[16,32], index: 3, kind: output, shape index: {}]  }
   0x1   :  { %9 = vsyncpa [#allocation6], 0 }
   0x2   :  { %10 = vsyncpa [#allocation4], 0  ;;  %s1164_s12 = smov [#allocation2]   ;;  %s1092_s16 = scalar_lea.hbm %s1280_s0, 256 }
   0x3   :  { %s16_s13 = sshll.u32 %s1164_s12, 4  ;;  %p1093_p0 = scmp.ne.s32.totalorder %s1280_s0, %s1092_s16  ;;  %s17_s13 = int_to_ptr.vmem [resolvable:$true] %s16_s13 }
   0x4   :  { %p1096_p1 = scmp.lt.u32.totalorder %s1092_s16, %s1280_s0 }
   0x6   :  { %p1098_p2 = pnand %p1096_p1, %p1093_p0 }
   0x8   :  { %1101 = shalt.err (!%p1098_p2)
}
   0x9   :  { %s1102_s21 = scalar_lea.vmem %s17_s13, 256  ;;  %p1107_p4 = scmp.lt.s32.totalorder %s17_s13, %s17_s13 }
   0xa   :  { %p1103_p3 = scmp.ne.s32.totalorder %s17_s13, %s1102_s21  ;;  %p1108_p5 = scmp.lt.s32.totalorder %s1102_s21, %s1102_s21 }
   0xc   :  { %p1109_p6 = por %p1108_p5, %p1107_p4 }
   0xe   :  { %p1110_p7 = pnand %p1109_p6, %p1103_p3 }
  0x10   :  { %1113 = shalt.err (!%p1110_p7)
}
  0x11   :  { %s1165_s22 = smov 128   ;;  %s1166_s23 = smov 8  }
  0x12   :  { %22 = dma.hbm_to_vmem [thread:$0]  %s1280_s0, 256, %s17_s13, [#allocation3], %s1165_s22, %s1165_s22, %s1166_s23  }
  0x13   :  { %s1167_s26 = smov [#allocation5]   ;;  %s1114_s30 = scalar_lea.hbm %s1282_s2, 3584 }
  0x14   :  { %s30_s27 = sshll.u32 %s1167_s26, 4  ;;  %p1115_p8 = scmp.ne.s32.totalorder %s1282_s2, %s1114_s30  ;;  %s31_s27 = int_to_ptr.vmem [resolvable:$true] %s30_s27 }
  0x15   :  { %p1118_p9 = scmp.lt.u32.totalorder %s1114_s30, %s1282_s2 }
  0x17   :  { %p1120_p10 = pnand %p1118_p9, %p1115_p8 }
  0x19   :  { %1123 = shalt.err (!%p1120_p10)
}
  0x1a   :  { %s1124_s8 = scalar_lea.vmem %s31_s27, 3584  ;;  %p1129_p12 = scmp.lt.s32.totalorder %s31_s27, %s31_s27 }
  0x1b   :  { %p1125_p11 = scmp.ne.s32.totalorder %s31_s27, %s1124_s8  ;;  %p1130_p13 = scmp.lt.s32.totalorder %s1124_s8, %s1124_s8 }
  0x1d   :  { %p1131_p0 = por %p1130_p13, %p1129_p12 }
  0x1f   :  { %p1132_p1 = pnand %p1131_p0, %p1125_p11 }
  0x21   :  { %1135 = shalt.err (!%p1132_p1)
}
  0x22   :  { %36 = dma.hbm_to_vmem [thread:$0]  %s1282_s2, 3584, %s31_s27, [#allocation6], %s1165_s22, %s1165_s22, %s1166_s23  }
  0x23   :  { %1158 = dma.done.wait [#allocation3], 256  }
  0x24   :  { %1159 = vsyncadd [#allocation3], 4294967040 }
  0x25   :  { %1160 = dma.done.wait [#allocation6], 3584  }
  0x26   :  { %1161 = vsyncadd [#allocation6], 4294963712  ;;  %vm55_vm0 = vcmask 261120   ;;  %v46_v0 = vld [vmem:[#allocation5] sm:$0xff]  ;;  %v47_v1 = vld [vmem:[#allocation5 + $0x8] sm:$0xff]  ;;  %v1168_v8 = vmov 0.0   ;;  %v305_v18 = vlaneseq }
  0x27   :  { %v48_v2 = vld [vmem:[#allocation5 + $0x10] sm:$0xff]  ;;  %v1026_v3 = vpack.c.bf16 %v47_v1, %v46_v0  ;;  %v49_v4 = vld [vmem:[#allocation5 + $0x18] sm:$0xff]  ;;  %975 = vmatprep.subr.mxu0 %v1168_v8  ;;  %vm1169_vm1 = vmmov 0   ;;  %v893_v9 = vld [vmem:[#allocation5 + $0x20] ss:$0 sm:$0xff]  ;;  %s1170_s2 = smov 96  }
  0x28   :  { %v1224_v5 = vld [vmem:[#allocation2] sm:$0xff]  ;;  %v1030_v6 = vpack.c.bf16 %v49_v4, %v48_v2  ;;  %v1228_v7 = vld [vmem:[#allocation2 + $0x8] sm:$0xff]  ;;  %977 = vmatprep.mubr.msk.f32.mxu0 %vm1169_vm1, %v1168_v8  ;;  %v1171_v16 = vmov 1966171168   ;;  %v306_v20 = vshrl.u32 %v305_v18, 7  ;;  %vm336_vm2 = vcmask 64512  }
  0x29   :  { %962 = vmatprep.mubr.msk.f32.mxu1 %vm55_vm0, %v1224_v5  ;;  %1027 = vmatprep.subr.bf16.mxu1 %v1026_v3  ;;  %v303_v17 = vunpack.c.l.s4 %v1171_v16  ;;  %v900_v22 = vld.sshfl [vmem:[%s1281_s1] sm:$0x11 pattern:$0x75316420]  ;;  %s1172_s1 = smov 64   ;;  %v511_v54 = vld [vmem:[#allocation5 + $0x28] sm:$0xff] }
  0x2a   :  { %1029 = vmatpush3.bf16.msra.mxu1 %v1026_v3  ;;  %v301_v23 = vcombine.high %v900_v22, %v900_v22  ;;  %v326_v28 = vsub.s32 0, %v306_v20  ;;  %v512_v55 = vld [vmem:[#allocation5 + $0x30] sm:$0xff]  ;;  %v513_v0 = vld [vmem:[#allocation5 + $0x38] sm:$0xff]  ;;  %v514_v1 = vld [vmem:[#allocation5 + $0x40] sm:$0xff]  ;;  %vm749_vm3 = vcmask 523264   ;;  %s1173_s12 = smov [#allocation7]  }
  0x2b   :  { %1031 = vmatprep.subr.bf16.mxu1 %v1030_v6  ;;  %v304_v19 = vunpack.c.0.s8 %v303_v17  ;;  %v1034_v56 = vpack.c.bf16 %v512_v55, %v511_v54  ;;  %v1038_v2 = vpack.c.bf16 %v514_v1, %v513_v0  ;;  %s880_s13 = sshll.u32 %s1173_s12, 4  ;;  %s881_s13 = int_to_ptr.vmem [resolvable:$true] %s880_s13 }
  0x2c   :  { %s1136_s14 = scalar_lea.vmem %s881_s13, 256  ;;  %p1141_p3 = scmp.lt.s32.totalorder %s881_s13, %s881_s13 }
  0x2d   :  { %v307_v21 = vsub.s32 %v304_v19, %v306_v20  ;;  %p1137_p2 = scmp.ne.s32.totalorder %s881_s13, %s1136_s14  ;;  %p1142_p4 = scmp.lt.s32.totalorder %s1136_s14, %s1136_s14 }
  0x2e   :  { %1033 = vmatpush3.bf16.msra.mxu1 %v1030_v6 }
  0x2f   :  { %965 = vmatprep.subr.mxu1 %v1168_v8  ;;  %v308_v24 = vrot.slane %v900_v22, %v307_v21  ;;  %v315_v26 = vrot.slane %v301_v23, %v307_v21  ;;  %p1143_p5 = por %p1142_p4, %p1141_p3 }
  0x31   :  { %963 = vmatmul.mubr.msk.f32.vlgmr.msra.gmra.mrb[0].mxu1 %vm55_vm0, %v1228_v7  ;;  %v901_v25 = vadd.f32 -1.0, %v308_v24  ;;  %v902_v29 = vadd.f32 -1.0, %v315_v26  ;;  %p1144_p6 = pnand %p1143_p5, %p1137_p2 }
  0x32   :  { %967 = vmatprep.mubr.msk.f32.mxu1 %vm1169_vm1, %v1168_v8 }
  0x33   :  { %v320_v27 = vmul.f32 1e+09, %v901_v25  ;;  %v321_v31 = vmul.f32 1e+09, %v902_v29  ;;  %v646_v29 = vld [vmem:[#allocation5 + $0x60] sm:$0xff] }
  0x35   :  { %v327_v30 = vrot.slane %v320_v27, %v326_v28  ;;  %v331_v36 = vrot.slane %v321_v31, %v326_v28  ;;  %v645_v27 = vld [vmem:[#allocation5 + $0x58] sm:$0xff] }
 0x104   :  { %v964_v10 = vpop.f32.mrb[0].mxu1 }
 0x105   :  { %v128_v11 = vpop.f32.mrb[1].mxu1  ;;  %v134_v13 = vadd.f32 %v964_v10, %v893_v9 }
 0x106   :  { %v129_v12 = vadd.f32 %v893_v9, %v128_v11  ;;  %v905_v9 = vld [vmem:[#allocation5 + $0x48] ss:$0 sm:$0xff] }
 0x108   :  { %138 = vrot.lane.b32.xlu0 %v129_v12, %s1170_s2 }
 0x10c   :  { %215 = vrot.lane.b32.xlu0 %v134_v13, %s1170_s2 }
 0x17a   :  { %v139_v14 = vpop.permute.xlu0 %138 }
 0x17b   :  { %966 = vmatpush3.xpose.msk.msra.mxu1 %vm55_vm0, %v139_v14 }
 0x17c   :  { %970 = vmatprep.subr.mxu1 %v1168_v8 }
 0x17e   :  { %968 = vmatmul.mubr.msk.f32.vlgmr.msra.gmra.mrb[2].mxu1 %vm55_vm0, %v129_v12  ;;  %v216_v15 = vpop.permute.xlu0 %215 }
 0x17f   :  { %971 = vmatpush3.xpose.msk.msra.mxu1 %vm55_vm0, %v216_v15  ;;  %972 = vmatprep.mubr.msk.f32.mxu1 %vm1169_vm1, %v1168_v8 }
 0x180   :  { %980 = vmatprep.subr.mxu1 %v1168_v8 }
 0x182   :  { %973 = vmatmul.mubr.msk.f32.vlgmr.msra.gmra.mrb[4].mxu1 %vm55_vm0, %v134_v13 }
 0x183   :  { %982 = vmatprep.mubr.msk.f32.mxu1 %vm1169_vm1, %v1168_v8 }
 0x251   :  { %v210_v32 = vpop.f32.mrb[2].mxu1 }
 0x252   :  { %v291_v33 = vmul.f32 0.17677669, %v210_v32  ;;  %v969_v34 = vpop.f32.mrb[3].mxu1  ;;  %v736_v32 = vld [vmem:[#allocation5 + $0x78] sm:$0xff] }
 0x253   :  { %v738_v34 = vld [vmem:[#allocation5 + $0x88] sm:$0xff] }
 0x254   :  { %v334_v35 = vadd.f32 %v327_v30, %v291_v33  ;;  %v647_v30 = vld [vmem:[#allocation5 + $0x68] sm:$0xff]  ;;  %v737_v33 = vld [vmem:[#allocation5 + $0x80] sm:$0xff] }
 0x255   :  { %v287_v37 = vpop.f32.mrb[4].mxu1  ;;  %v1046_v31 = vpack.c.bf16 %v647_v30, %v646_v29  ;;  %v916_v29 = vld [vmem:[#allocation5 + $0xd0] ss:$0 sm:$0xff] }
 0x256   :  { %v292_v38 = vmul.f32 0.17677669, %v287_v37  ;;  %v974_v39 = vpop.f32.mrb[5].mxu1  ;;  %v337_v40 = vsel %vm336_vm2, %v334_v35, -inf }
 0x257   :  { %338 = vmax.xlane.f32.xlu1 %v337_v40  ;;  %v741_v39 = vld [vmem:[#allocation5 + $0xa0] sm:$0xff] }
 0x258   :  { %v335_v41 = vadd.f32 %v331_v36, %v292_v38  ;;  %v739_v36 = vld [vmem:[#allocation5 + $0x90] sm:$0xff]  ;;  %v740_v38 = vld [vmem:[#allocation5 + $0x98] sm:$0xff] }
 0x259   :  { %v1054_v37 = vpack.c.bf16 %v739_v36, %v738_v34  ;;  %v1058_v40 = vpack.c.bf16 %v741_v39, %v740_v38 }
 0x25a   :  { %v340_v42 = vsel %vm336_vm2, %v335_v41, -inf }
 0x25b   :  { %341 = vmax.xlane.f32.xlu1 %v340_v42 }
 0x26c   :  { %359 = vrot.lane.b32.xlu1 %v129_v12, %s1172_s1 }
 0x2e4   :  { %v339_v43 = vpop.xlane.xlu1 %338 }
 0x2e5   :  { %v343_v44 = vsub.f32 %v334_v35, %v339_v43  ;;  %v1050_v35 = vpack.c.bf16 %v737_v33, %v736_v32 }
 0x2e7   :  { %v345_v45 = vmul.f32 1.442695, %v343_v44 }
 0x2e8   :  { %v342_v46 = vpop.xlane.xlu1 %341 }
 0x2e9   :  { %1076 = vpow2.f32 %v345_v45  ;;  %v344_v47 = vsub.f32 %v335_v41, %v342_v46 }
 0x2eb   :  { %v347_v48 = vmul.f32 1.442695, %v344_v47 }
 0x2ec   :  { %v360_v49 = vpop.permute.xlu1 %359 }
 0x2ed   :  { %1078 = vpow2.f32 %v347_v48  ;;  %976 = vmatpush3.msra.mxu0 %v360_v49  ;;  %v908_v48 = vld [vmem:[#allocation5 + $0xc0] ss:$0 sm:$0xff] }
 0x2ee   :  { %1035 = vmatprep.subr.bf16.mxu0 %v1034_v56 }
 0x2f3   :  { %v1077_v50 = vpop.eup %1076 }
 0x2f4   :  { %v349_v51 = vsel %vm336_vm2, %v1077_v50, 0.0 }
 0x2f5   :  { %350 = vadd.xlane.f32.xlu0 %v349_v51 }
 0x2f7   :  { %v1079_v52 = vpop.eup %1078 }
 0x2f8   :  { %v352_v53 = vsel %vm336_vm2, %v1079_v52, 0.0 }
 0x2f9   :  { %353 = vadd.xlane.f32.xlu1 %v352_v53 }
 0x30a   :  { %435 = vrot.lane.b32.xlu1 %v134_v13, %s1172_s1 }
 0x382   :  { %v351_v57 = vpop.xlane.xlu0 %350 }
 0x383   :  { %1080 = vrcp.f32 %v351_v57  ;;  %v742_v57 = vld [vmem:[#allocation5 + $0xa8] sm:$0xff] }
 0x386   :  { %v354_v58 = vpop.xlane.xlu1 %353 }
 0x387   :  { %1082 = vrcp.f32 %v354_v58  ;;  %v743_v58 = vld [vmem:[#allocation5 + $0xb0] sm:$0xff] }
 0x38a   :  { %v436_v59 = vpop.permute.xlu1 %435 }
 0x38b   :  { %981 = vmatpush3.msra.mxu1 %v436_v59  ;;  %v1062_v59 = vpack.c.bf16 %v743_v58, %v742_v57 }
 0x38d   :  { %v1081_v60 = vpop.eup %1080 }
 0x38e   :  { %v357_v61 = vmul.f32 %v1081_v60, %v1077_v50  ;;  %v909_v50 = vld [vmem:[#allocation5 + $0xc8] ss:$0 sm:$0xff]  ;;  %v910_v60 = vld [vmem:[#allocation5 + $0x70] ss:$0 sm:$0xff] }
 0x390   :  { %978 = vmatmul.mubr.msk.f32.vlgmr.msra.gmra.mrb[0].mxu0 %vm336_vm2, %v357_v61 }
 0x391   :  { %v1083_v62 = vpop.eup %1082  ;;  %1037 = vmatpush3.bf16.msra.mxu0 %v1034_v56 }
 0x392   :  { %v358_v63 = vmul.f32 %v1083_v62, %v1079_v52  ;;  %1039 = vmatprep.subr.bf16.mxu0 %v1038_v2 }
 0x394   :  { %983 = vmatmul.mubr.msk.f32.vlgmr.msra.gmra.mrb[6].mxu1 %vm336_vm2, %v358_v63 }
 0x395   :  { %1041 = vmatpush3.bf16.msra.mxu0 %v1038_v2 }
 0x396   :  { %1051 = vmatprep.subr.bf16.mxu0 %v1050_v35 }
 0x463   :  { %v431_v3 = vpop.f32.mrb[0].mxu0 }
 0x464   :  { %v979_v4 = vpop.f32.mrb[1].mxu0  ;;  %993 = vmatprep.mubr.msk.f32.mxu0 %vm55_vm0, %v431_v3  ;;  %v913_v3 = vld [vmem:[#allocation5 + $0xb8] ss:$0 sm:$0xff] }
 0x467   :  { %v507_v6 = vpop.f32.mrb[6].mxu1 }
 0x468   :  { %v984_v8 = vpop.f32.mrb[7].mxu1  ;;  %994 = vmatmul.mubr.msk.f32.vlgmr.msra.gmra.mrb[2].mxu0 %vm55_vm0, %v507_v6 }
 0x469   :  { %1053 = vmatpush3.bf16.msra.mxu0 %v1050_v35 }
 0x46a   :  { %1055 = vmatprep.subr.bf16.mxu0 %v1054_v37 }
 0x46d   :  { %1057 = vmatpush3.bf16.msra.mxu0 %v1054_v37 }
 0x46e   :  { %1059 = vmatprep.subr.bf16.mxu0 %v1058_v40 }
 0x471   :  { %1061 = vmatpush3.bf16.msra.mxu0 %v1058_v40 }
 0x472   :  { %1063 = vmatprep.subr.bf16.mxu0 %v1062_v59 }
 0x475   :  { %1065 = vmatpush3.bf16.msra.mxu0 %v1062_v59 }
 0x53b   :  { %v995_v10 = vpop.f32.mrb[2].mxu0 }
 0x53c   :  { %v598_v11 = vadd.f32 %v995_v10, %v905_v9  ;;  %v592_v12 = vpop.f32.mrb[3].mxu0 }
 0x53d   :  { %v593_v13 = vadd.f32 %v905_v9, %v592_v12 }
 0x53e   :  { %v602_v14 = vadd.f32 %v598_v11, %v1228_v7 }
 0x53f   :  { %v601_v15 = vadd.f32 %v593_v13, %v1224_v5  ;;  %v644_v5 = vld [vmem:[#allocation5 + $0x50] sm:$0xff] }
 0x540   :  { %v608_v16 = vsel %vm55_vm0, %v602_v14, 0.0  ;;  %v1042_v28 = vpack.c.bf16 %v645_v27, %v644_v5 }
 0x541   :  { %609 = vadd.xlane.f32.xlu0 %v608_v16  ;;  %v605_v17 = vsel %vm55_vm0, %v601_v15, 0.0 }
 0x542   :  { %606 = vadd.xlane.f32.xlu1 %v605_v17  ;;  %1043 = vmatprep.subr.bf16.mxu1 %v1042_v28 }
 0x543   :  { %1045 = vmatpush3.bf16.msra.mxu1 %v1042_v28 }
 0x544   :  { %1047 = vmatprep.subr.bf16.mxu1 %v1046_v31 }
 0x547   :  { %1049 = vmatpush3.bf16.msra.mxu1 %v1046_v31  ;;  %v917_v31 = vld [vmem:[#allocation5 + $0xd8] ss:$0 sm:$0xff] }
 0x5ce   :  { %v610_v18 = vpop.xlane.xlu0 %609 }
 0x5cf   :  { %v613_v19 = vmul.f32 0.03125, %v610_v18  ;;  %v607_v20 = vpop.xlane.xlu1 %606 }
 0x5d0   :  { %v612_v21 = vmul.f32 0.03125, %v607_v20 }
 0x5d1   :  { %v615_v22 = vsub.f32 %v602_v14, %v613_v19 }
 0x5d2   :  { %v614_v23 = vsub.f32 %v601_v15, %v612_v21 }
 0x5d3   :  { %v617_v26 = vmul.f32 %v615_v22, %v615_v22 }
 0x5d4   :  { %v616_v24 = vmul.f32 %v614_v23, %v614_v23 }
 0x5d5   :  { %v621_v7 = vsel %vm55_vm0, %v617_v26, 0.0 }
 0x5d6   :  { %v618_v25 = vsel %vm55_vm0, %v616_v24, 0.0 }
 0x5d7   :  { %619 = vadd.xlane.f32.xlu0 %v618_v25 }
 0x5db   :  { %622 = vadd.xlane.f32.xlu0 %v621_v7 }
 0x664   :  { %v620_v41 = vpop.xlane.xlu0 %619 }
 0x665   :  { %v624_v42 = vmul.f32 0.03125, %v620_v41 }
 0x667   :  { %v626_v43 = vadd.f32 1e-05, %v624_v42 }
 0x668   :  { %v623_v44 = vpop.xlane.xlu0 %622 }
 0x669   :  { %1084 = vrsqrt.f32 %v626_v43  ;;  %v625_v45 = vmul.f32 0.03125, %v623_v44 }
 0x66b   :  { %v627_v46 = vadd.f32 1e-05, %v625_v45 }
 0x66d   :  { %1086 = vrsqrt.f32 %v627_v46 }
 0x673   :  { %v1085_v47 = vpop.eup %1084 }
 0x674   :  { %v630_v49 = vmul.f32 %v1085_v47, %v614_v23 }
 0x676   :  { %v636_v51 = vmul.f32 %v908_v48, %v630_v49 }
 0x677   :  { %v1087_v52 = vpop.eup %1086 }
 0x678   :  { %v631_v53 = vmul.f32 %v1087_v52, %v615_v22  ;;  %v642_v54 = vadd.f32 %v909_v50, %v636_v51 }
 0x67a   :  { %v637_v55 = vmul.f32 %v908_v48, %v631_v53  ;;  %1004 = vmatprep.mubr.msk.f32.mxu1 %vm55_vm0, %v642_v54 }
 0x67c   :  { %v643_v56 = vadd.f32 %v909_v50, %v637_v55 }
 0x67e   :  { %1005 = vmatmul.mubr.msk.f32.vlgmr.msra.gmra.mrb[8].mxu1 %vm55_vm0, %v643_v56 }
 0x751   :  { %v1006_v61 = vpop.f32.mrb[8].mxu1 }
 0x752   :  { %v731_v62 = vadd.f32 %v1006_v61, %v910_v60  ;;  %v725_v63 = vpop.f32.mrb[9].mxu1 }
 0x753   :  { %v726_v0 = vadd.f32 %v910_v60, %v725_v63 }
 0x754   :  { %v735_v2 = vmax.f32 %v731_v62, 0.0 }
 0x755   :  { %v734_v1 = vmax.f32 %v726_v0, 0.0 }
 0x757   :  { %1023 = vmatprep.mubr.msk.f32.mxu0 %vm749_vm3, %v734_v1 }
 0x758   :  { %1024 = vmatmul.mubr.msk.f32.vlgmr.msra.gmra.mrb[4].mxu0 %vm749_vm3, %v735_v2 }
 0x82b   :  { %v1025_v4 = vpop.f32.mrb[4].mxu0 }
 0x82c   :  { %v822_v6 = vpop.f32.mrb[5].mxu0  ;;  %v828_v8 = vadd.f32 %v1025_v4, %v913_v3 }
 0x82d   :  { %v823_v9 = vadd.f32 %v913_v3, %v822_v6 }
 0x82e   :  { %v832_v12 = vadd.f32 %v828_v8, %v643_v56 }
 0x82f   :  { %v831_v10 = vadd.f32 %v823_v9, %v642_v54 }
 0x830   :  { %v838_v13 = vsel %vm55_vm0, %v832_v12, 0.0 }
 0x831   :  { %v835_v11 = vsel %vm55_vm0, %v831_v10, 0.0 }
 0x832   :  { %836 = vadd.xlane.f32.xlu0 %v835_v11 }
 0x836   :  { %839 = vadd.xlane.f32.xlu0 %v838_v13 }
 0x8bf   :  { %v837_v14 = vpop.xlane.xlu0 %836 }
 0x8c0   :  { %v841_v15 = vmul.f32 0.03125, %v837_v14 }
 0x8c2   :  { %v843_v16 = vsub.f32 %v831_v10, %v841_v15 }
 0x8c3   :  { %v840_v17 = vpop.xlane.xlu0 %839 }
 0x8c4   :  { %v842_v18 = vmul.f32 0.03125, %v840_v17  ;;  %v845_v19 = vmul.f32 %v843_v16, %v843_v16 }
 0x8c6   :  { %v844_v20 = vsub.f32 %v832_v12, %v842_v18  ;;  %v847_v21 = vsel %vm55_vm0, %v845_v19, 0.0 }
 0x8c7   :  { %848 = vadd.xlane.f32.xlu0 %v847_v21 }
 0x8c8   :  { %v846_v22 = vmul.f32 %v844_v20, %v844_v20 }
 0x8ca   :  { %v850_v23 = vsel %vm55_vm0, %v846_v22, 0.0 }
 0x8cb   :  { %851 = vadd.xlane.f32.xlu0 %v850_v23 }
 0x954   :  { %v849_v24 = vpop.xlane.xlu0 %848 }
 0x955   :  { %v853_v25 = vmul.f32 0.03125, %v849_v24 }
 0x957   :  { %v855_v26 = vadd.f32 1e-05, %v853_v25 }
 0x958   :  { %v852_v7 = vpop.xlane.xlu0 %851 }
 0x959   :  { %1088 = vrsqrt.f32 %v855_v26  ;;  %v854_v5 = vmul.f32 0.03125, %v852_v7 }
 0x95b   :  { %v856_v27 = vadd.f32 1e-05, %v854_v5 }
 0x95d   :  { %1090 = vrsqrt.f32 %v856_v27 }
 0x963   :  { %v1089_v28 = vpop.eup %1088 }
 0x964   :  { %v859_v30 = vmul.f32 %v1089_v28, %v843_v16 }
 0x966   :  { %v865_v32 = vmul.f32 %v916_v29, %v859_v30 }
 0x967   :  { %v1091_v33 = vpop.eup %1090 }
 0x968   :  { %v860_v34 = vmul.f32 %v1091_v33, %v844_v20  ;;  %v871_v35 = vadd.f32 %v917_v31, %v865_v32 }
 0x96a   :  { %v866_v36 = vmul.f32 %v916_v29, %v860_v34  ;;  %873 = vst.msk [vmem:[#allocation7] sm:$0xff] %vm55_vm0, %v871_v35 }
 0x96c   :  { %v872_v37 = vadd.f32 %v917_v31, %v866_v36 }
 0x96e   :  { %874 = vst.msk [vmem:[#allocation7 + $0x8] sm:$0xff] %vm55_vm0, %v872_v37 }
 0x96f   :  { %1147 = shalt.err (!%p1144_p6)
}
 0x970   :  { %s1148_s17 = scalar_lea.hbm %s1283_s3, 256 }
 0x971   :  { %p1149_p7 = scmp.ne.s32.totalorder %s1283_s3, %s1148_s17  ;;  %p1152_p8 = scmp.lt.u32.totalorder %s1148_s17, %s1283_s3 }
 0x973   :  { %p1154_p9 = pnand %p1152_p8, %p1149_p7 }
 0x975   :  { %1157 = shalt.err (!%p1154_p9)
}
 0x976   :  { %886 = dma.vmem_to_hbm [thread:$0]  %s881_s13, 256, %s1283_s3, [#allocation4], %s1165_s22, %s1165_s22, %s1166_s23  }
 0x977   :  { %1162 = dma.done.wait [#allocation4], 256  }
 0x978   :  { %1163 = vsyncadd [#allocation4], 4294967040 }
 0x979   :  { %890 = vsyncpa [#allocation3], 1 }
 0x97a   :  { %891 = vsyncpa [#allocation6], 1 }
 0x97b   :  { %892 = vsyncpa [#allocation4], 1 }

</bundles_post_ra>
